<compile_context>
chip_gen: v7x
topology: tpu7x:2x2x1
jax: 0.10.0
libtpu: 0.0.40
codegen_flags: <defaults>
</compile_context>

<pallas_src>
import functools

import jax
import jax.numpy as jnp
from jax.experimental import pallas as pl
from jax.experimental.pallas import tpu as pltpu


def _round_up(x, m):
    return (x + m - 1) // m * m


def _cdiv(a, b):
    return -(-a // b)


# ---------------------------------------------------------------------------
# Kernels
# ---------------------------------------------------------------------------

def _fused_matmul_kernel(x_ref, w_ref, o_ref):
    # x_ref: (tile_n, K*D_in)    features, neighbor axis folded into contraction
    # w_ref: (K*D_in, tile_dout) weight stacked K times (1/K folded for 'mean')
    # o_ref: (tile_n, tile_dout)
    o_ref[...] = jnp.dot(
        x_ref[...], w_ref[...], preferred_element_type=jnp.float32
    ).astype(o_ref.dtype)


def _max_matmul_kernel(nf_ref, w_ref, o_ref, *, num_neighbors):
    # nf_ref: (tile_n, K, D_in); w_ref: (D_in, tile_dout); o_ref: (tile_n, tile_dout)
    # Running max one neighbor slab at a time keeps only one slab + the
    # accumulator live (no whole-tile temporary); VPU has plenty of slack under
    # the HBM DMA.
    m = nf_ref[:, 0, :]
    for kk in range(1, num_neighbors):
        m = jnp.maximum(m, nf_ref[:, kk, :])
    o_ref[...] = jnp.dot(
        m.astype(w_ref.dtype), w_ref[...], preferred_element_type=jnp.float32
    ).astype(o_ref.dtype)


# ---------------------------------------------------------------------------
# Tiling / VMEM heuristics
# ---------------------------------------------------------------------------

def _vmem_budget():
    """(footprint budget, vmem_limit_bytes), chosen per TPU generation."""
    cap = 64 * 1024 * 1024  # conservative default = v7x per-TensorCore VMEM
    try:
        cap = int(pltpu.get_tpu_info().vmem_capacity_bytes)
    except Exception:
        pass
    if cap >= 100 * 1024 * 1024:                      # v5e / v6e: 128 MiB VMEM
        return 64 * 1024 * 1024, 100 * 1024 * 1024
    return 28 * 1024 * 1024, 52 * 1024 * 1024         # v7x: 64 MiB per TC


def _choose_tiles(n, d_out_p, feat_row_bytes, w_rows, w_bytes, extra_row_bytes,
                  budget, feat_itemsize):
    """Pick (tile_n, tile_dout).

    feat_row_bytes : feature bytes per output row inside one tile.
    w_rows         : contraction rows of the weight block.
    extra_row_bytes: in-kernel per-row temporaries (accumulators / casts).
    """
    # Sub-32-bit dtypes pack along sublanes: align the node tile accordingly.
    align = {4: 8, 2: 16, 1: 32}.get(feat_itemsize, 8)

    # Tile the weight columns only when its double-buffered block would eat
    # more than a third of the budget (very large D_out); tile_dout stays a
    # multiple of 128 so output stores remain lane-dense and unmasked.
    tile_dout = d_out_p
    max_w_bytes = budget // 3
    if d_out_p > 128 and 2 * w_rows * tile_dout * w_bytes > max_w_bytes:
        tile_dout = (max_w_bytes // (2 * w_rows * w_bytes)) // 128 * 128
        tile_dout = int(max(128, min(d_out_p, tile_dout)))

    def footprint(t):
        return (2 * t * feat_row_bytes                 # double-buffered feature block
                + 2 * w_rows * tile_dout * w_bytes     # double-buffered weight block
                + 2 * t * tile_dout * 4                # double-buffered f32 output
                + t * extra_row_bytes)                 # in-kernel temporaries

    t = 1024 if budget >= 48 * 1024 * 1024 else 512
    while t > align and footprint(t) > budget:
        t //= 2
    t = max(align, min(t, _round_up(n, align)))
    # Prefer >= 4 grid steps over nodes (>= 2 per TensorCore on v7x) when the
    # node count allows, so both cores get work and prefetch overlaps compute.
    if _cdiv(n, t) < 4 and t > 4 * align:
        t = max(align, _round_up(_cdiv(n, 4), align))
    return int(t), int(tile_dout)


# ---------------------------------------------------------------------------
# Wrapper
# ---------------------------------------------------------------------------

def neighbor_aggregator(neighbor_feature, weight, *, aggr_method="mean",
                        compute_dtype=None, tile_n=None, tile_dout=None):
    """GraphSAGE NeighborAggregator forward (use_bias=False).

    neighbor_feature: (N, K, D_in); weight: (D_in, D_out) -> (N, D_out) float32.

    compute_dtype: optional dtype (e.g. jnp.bfloat16) for the MXU fast path.
      NOTE: a standalone cast is itself a full HBM round trip over the feature
      tensor -- only take this path if the features already live in that dtype
      or the cast fuses with an upstream producer.
    """
    n, k, d_in = neighbor_feature.shape
    d_in_w, d_out = weight.shape
    assert d_in_w == d_in, "weight/feature input_dim mismatch"
    if aggr_method not in ("mean", "sum", "max"):
        raise ValueError(
            "Unknown aggr type, expected sum, max, or mean, but got {}".format(
                aggr_method))

    # Fold the 1/K of 'mean' into the weight (kernel never divides).
    w_eff = weight * (1.0 / k) if aggr_method == "mean" else weight

    if compute_dtype is not None:
        neighbor_feature = neighbor_feature.astype(compute_dtype)
        w_eff = w_eff.astype(compute_dtype)

    # Lane-dense output: pad D_out to a multiple of 128 only if needed, so the
    # final slice is skipped entirely when D_out is already lane-aligned.
    d_out_p = _round_up(d_out, 128)
    if d_out_p != d_out:
        w_eff = jnp.pad(w_eff, ((0, 0), (0, d_out_p - d_out)))

    feat_bytes = jnp.dtype(neighbor_feature.dtype).itemsize
    w_bytes = jnp.dtype(w_eff.dtype).itemsize
    budget, vmem_limit = _vmem_budget()

    if aggr_method in ("mean", "sum"):
        # Fold the neighbor sum into the MXU contraction:
        #   (N, K, D_in) --reshape--> (N, K*D_in)   (contiguous: free, no HBM pass)
        #   weight stacked K times along rows => the matmul sums over neighbors.
        contraction = k * d_in
        x = neighbor_feature.reshape(n, contraction)
        w_op = jnp.tile(w_eff, (k, 1))                        # (K*D_in, D_out_p)
        auto_tn, auto_td = _choose_tiles(
            n, d_out_p, feat_row_bytes=contraction * feat_bytes,
            w_rows=contraction, w_bytes=w_bytes, extra_row_bytes=0,
            budget=budget, feat_itemsize=feat_bytes)
        tn = tile_n or auto_tn
        td = tile_dout or auto_td
        kernel = _fused_matmul_kernel
        in_specs = [
            pl.BlockSpec((tn, contraction), lambda i, j: (i, 0)),
            pl.BlockSpec((contraction, td), lambda i, j: (0, j)),
        ]
        operands = (x, w_op)
        flops = 2 * n * contraction * d_out_p
    else:
        # max: keep the native (N, K, D_in) layout; in-kernel slab-wise reduce.
        auto_tn, auto_td = _choose_tiles(
            n, d_out_p, feat_row_bytes=k * d_in * feat_bytes,
            w_rows=d_in, w_bytes=w_bytes,
            extra_row_bytes=d_in * (4 + feat_bytes),  # running max + matmul cast
            budget=budget, feat_itemsize=feat_bytes)
        tn = tile_n or auto_tn
        td = tile_dout or auto_td
        kernel = functools.partial(_max_matmul_kernel, num_neighbors=k)
        in_specs = [
            pl.BlockSpec((tn, k, d_in), lambda i, j: (i, 0, 0)),
            pl.BlockSpec((d_in, td), lambda i, j: (0, j)),
        ]
        operands = (neighbor_feature, w_eff)
        flops = 2 * n * d_in * d_out_p

    grid = (_cdiv(n, tn), _cdiv(d_out_p, td))
    bytes_accessed = (int(operands[0].size) * feat_bytes
                      + int(operands[1].size) * w_bytes
                      + n * d_out_p * 4)

    out = pl.pallas_call(
        kernel,
        out_shape=jax.ShapeDtypeStruct((n, d_out_p), jnp.float32),
        grid_spec=pltpu.PrefetchScalarGridSpec(
            num_scalar_prefetch=0,
            grid=grid,
            in_specs=in_specs,
            out_specs=pl.BlockSpec((tn, td), lambda i, j: (i, j)),
        ),
        compiler_params=pltpu.CompilerParams(
            dimension_semantics=("parallel", "parallel"),
            vmem_limit_bytes=vmem_limit,
        ),
        cost_estimate=pl.CostEstimate(
            flops=flops, transcendentals=0, bytes_accessed=int(bytes_accessed)),
    )(*operands)

    # No node-axis padding was materialized (the ragged last block is masked on
    # writeback), so the only slice needed is over D_out, and only when padded.
    if d_out_p != d_out:
        out = out[:, :d_out]
    return out


def kaiming_uniform_weight(key, input_dim, output_dim):
    # torch.nn.init.kaiming_uniform_ on a (input_dim, output_dim) tensor uses
    # fan_in = tensor.size(1) = output_dim (torch's convention for this layout),
    # gain = sqrt(2) -> bound = sqrt(6 / output_dim).  Matches the module.
    bound = jnp.sqrt(6.0 / output_dim)
    return jax.random.uniform(
        key, (input_dim, output_dim), dtype=jnp.float32, minval=-bound, maxval=bound)


if __name__ == "__main__":
    input_dim = 32
    output_dim = 64
    num_nodes = 16
    num_neighbors = 8

    key = jax.random.PRNGKey(0)
    k_w, k_x = jax.random.split(key)

    weight = kaiming_uniform_weight(k_w, input_dim, output_dim)
    neighbor_feature = jax.random.normal(
        k_x, (num_nodes, num_neighbors, input_dim), dtype=jnp.float32)

    ref_mean = jnp.matmul(neighbor_feature.mean(axis=1), weight)
    ref_sum = jnp.matmul(neighbor_feature.sum(axis=1), weight)
    ref_max = jnp.matmul(neighbor_feature.max(axis=1), weight)

    # mean (exact semantics of the PyTorch module's default).
    out_mean = jax.block_until_ready(
        neighbor_aggregator(neighbor_feature, weight, aggr_method="mean"))
    assert out_mean.shape == (num_nodes, output_dim)
    assert jnp.allclose(out_mean, ref_mean, atol=1e-4, rtol=1e-4)

    # sum / max branches.
    out_sum = jax.block_until_ready(
        neighbor_aggregator(neighbor_feature, weight, aggr_method="sum"))
    assert jnp.allclose(out_sum, ref_sum, atol=1e-3, rtol=1e-4)

    out_max = jax.block_until_ready(
        neighbor_aggregator(neighbor_feature, weight, aggr_method="max"))
    assert jnp.allclose(out_max, ref_max, atol=1e-4, rtol=1e-4)

    # bf16 fast path (operands cast once in the wrapper, f32 accumulation).
    out_bf16 = jax.block_until_ready(
        neighbor_aggregator(neighbor_feature, weight, aggr_method="mean",
                            compute_dtype=jnp.bfloat16))
    assert jnp.allclose(out_bf16, ref_mean, atol=1e-1, rtol=1e-1)

    # Ragged node count (N not a tile multiple): exercises the no-pad, masked
    # last-block writeback path that replaced the wrapper-side jnp.pad.
    n2 = 20
    nf2 = jax.random.normal(jax.random.PRNGKey(1),
                            (n2, num_neighbors, input_dim), dtype=jnp.float32)
    out2 = jax.block_until_ready(
        neighbor_aggregator(nf2, weight, aggr_method="mean"))
    ref2 = jnp.matmul(nf2.mean(axis=1), weight)
    assert out2.shape == (n2, output_dim)
    assert jnp.allclose(out2, ref2, atol=1e-4, rtol=1e-4)

    print("KERNEL_OK")
</pallas_src>

<mosaic_0001>
module attributes {stable_mosaic.version = 11 : i64} {
  func.func @_fused_matmul_kernel(%arg0: i32, %arg1: i32, %arg2: memref<16x256xf32, #tpu.memory_space<vmem>>, %arg3: memref<256x128xf32, #tpu.memory_space<vmem>>, %arg4: memref<16x128xf32, #tpu.memory_space<vmem>>) attributes {dimension_semantics = [#tpu.dimension_semantics<parallel>, #tpu.dimension_semantics<parallel>], iteration_bounds = array<i64: 1, 1>, scalar_prefetch = 0 : i64, scratch_operands = 0 : i64, tpu.core_type = #tpu.core_type<tc>, window_params = [{transform_indices = @transform_0, window_bounds = array<i64: 16, 256>}, {transform_indices = @transform_1, window_bounds = array<i64: 256, 128>}, {transform_indices = @transform_2, window_bounds = array<i64: 16, 128>}]} {
    %c0 = arith.constant 0 : index
    %c0_0 = arith.constant 0 : index
    %0 = vector.load %arg2[%c0, %c0_0] : memref<16x256xf32, #tpu.memory_space<vmem>>, vector<16x256xf32>
    %c0_1 = arith.constant 0 : index
    %c0_2 = arith.constant 0 : index
    %1 = vector.load %arg3[%c0_1, %c0_2] : memref<256x128xf32, #tpu.memory_space<vmem>>, vector<256x128xf32>
    %cst = arith.constant dense<0.000000e+00> : vector<16x128xf32>
    %2 = tpu.matmul %0, %1, %cst {dimension_numbers = #tpu.dot_dimension_numbers<[1], [0], [0], [1], [0, 0, 1, 1], [], []>} : vector<16x256xf32>, vector<256x128xf32>, vector<16x128xf32> -> vector<16x128xf32>
    %c0_3 = arith.constant 0 : index
    %c0_4 = arith.constant 0 : index
    %3 = vector.load %arg4[%c0_3, %c0_4] : memref<16x128xf32, #tpu.memory_space<vmem>>, vector<16x128xf32>
    tpu.vector_store %arg4[%c0_3, %c0_4], %2 {strides = array<i32>} : memref<16x128xf32, #tpu.memory_space<vmem>>, vector<16x128xf32>,
    return
  }
  func.func @transform_0(%arg0: i32, %arg1: i32) -> (i32, i32) {
    %c0_i32 = arith.constant 0 : i32
    %c0_i32_0 = arith.constant 0 : i32
    return %arg0, %c0_i32 : i32, i32
  }
  func.func @transform_1(%arg0: i32, %arg1: i32) -> (i32, i32) {
    %c0_i32 = arith.constant 0 : i32
    %c0_i32_0 = arith.constant 0 : i32
    return %c0_i32, %arg1 : i32, i32
  }
  func.func @transform_2(%arg0: i32, %arg1: i32) -> (i32, i32) {
    %c0_i32 = arith.constant 0 : i32
    return %arg0, %arg1 : i32, i32
  }
}

</mosaic_0001>

<bundles_post_ra>
// kernel: tpu_custom_call.1
= control target key start
LH: loop header
LB: loop body
LE: loop exit
PB: predicated region body
PF: predicated region fallthrough
CT: control target
= control target key end

     0   :  { %7 = vsyncpa [#allocation3], 0  ;;  %s400_s0 = inlined_call_operand.hbm [shape: f32[16,256], index: 0, kind: input, shape index: {}]   ;;  %s401_s1 = inlined_call_operand.hbm [shape: f32[256,128], index: 1, kind: input, shape index: {}]   ;;  %s402_s2 = inlined_call_operand.hbm [shape: f32[16,128], index: 2, kind: output, shape index: {}]  }
   0x1   :  { %8 = vsyncpa [#allocation6], 0 }
   0x2   :  { %9 = vsyncpa [#allocation4], 0  ;;  %s336_s9 = smov [#allocation2]   ;;  %s264_s13 = scalar_lea.hbm %s400_s0, 512 }
   0x3   :  { %s15_s10 = sshll.u32 %s336_s9, 4  ;;  %p265_p0 = scmp.ne.s32.totalorder %s400_s0, %s264_s13  ;;  %s16_s10 = int_to_ptr.vmem [resolvable:$true] %s15_s10 }
   0x4   :  { %p268_p1 = scmp.lt.u32.totalorder %s264_s13, %s400_s0 }
   0x6   :  { %p270_p2 = pnand %p268_p1, %p265_p0 }
   0x8   :  { %273 = shalt.err (!%p270_p2)
}
   0x9   :  { %s274_s18 = scalar_lea.vmem %s16_s10, 512  ;;  %p279_p4 = scmp.lt.s32.totalorder %s16_s10, %s16_s10 }
   0xa   :  { %p275_p3 = scmp.ne.s32.totalorder %s16_s10, %s274_s18  ;;  %p280_p5 = scmp.lt.s32.totalorder %s274_s18, %s274_s18 }
   0xc   :  { %p281_p6 = por %p280_p5, %p279_p4 }
   0xe   :  { %p282_p7 = pnand %p281_p6, %p275_p3 }
  0x10   :  { %285 = shalt.err (!%p282_p7)
}
  0x11   :  { %s337_s19 = smov 256   ;;  %s338_s20 = smov 16  }
  0x12   :  { %21 = dma.hbm_to_vmem [thread:$0]  %s400_s0, 512, %s16_s10, [#allocation3], %s337_s19, %s337_s19, %s338_s20  }
  0x13   :  { %s339_s23 = smov [#allocation5]   ;;  %s286_s27 = scalar_lea.hbm %s401_s1, 4096 }
  0x14   :  { %s27_s24 = sshll.u32 %s339_s23, 4  ;;  %p287_p8 = scmp.ne.s32.totalorder %s401_s1, %s286_s27  ;;  %s28_s24 = int_to_ptr.vmem [resolvable:$true] %s27_s24 }
  0x15   :  { %p290_p9 = scmp.lt.u32.totalorder %s286_s27, %s401_s1 }
  0x17   :  { %p292_p10 = pnand %p290_p9, %p287_p8 }
  0x19   :  { %295 = shalt.err (!%p292_p10)
}
  0x1a   :  { %s296_s4 = scalar_lea.vmem %s28_s24, 4096  ;;  %p301_p12 = scmp.lt.s32.totalorder %s28_s24, %s28_s24 }
  0x1b   :  { %p297_p11 = scmp.ne.s32.totalorder %s28_s24, %s296_s4  ;;  %p302_p13 = scmp.lt.s32.totalorder %s296_s4, %s296_s4 }
  0x1d   :  { %p303_p0 = por %p302_p13, %p301_p12 }
  0x1f   :  { %p304_p1 = pnand %p303_p0, %p297_p11 }
  0x21   :  { %307 = shalt.err (!%p304_p1)
}
  0x22   :  { %s340_s0 = smov 128   ;;  %s341_s5 = smov 8  }
  0x23   :  { %33 = dma.hbm_to_vmem [thread:$0]  %s401_s1, 4096, %s28_s24, [#allocation6], %s340_s0, %s340_s0, %s341_s5  }
  0x24   :  { %330 = dma.done.wait [#allocation3], 512  }
  0x25   :  { %331 = vsyncadd [#allocation3], 4294966784 }
  0x26   :  { %332 = dma.done.wait [#allocation6], 4096  }
  0x27   :  { %333 = vsyncadd [#allocation6], 4294963200  ;;  %v60_v0 = vld [vmem:[#allocation5 + $0x80] sm:$0xff]  ;;  %v61_v1 = vld [vmem:[#allocation5 + $0x88] sm:$0xff]  ;;  %s342_s1 = smov [#allocation7]  }
  0x28   :  { %v44_v2 = vld [vmem:[#allocation5] sm:$0xff]  ;;  %v209_v3 = vpack.c.bf16 %v61_v1, %v60_v0  ;;  %v45_v4 = vld [vmem:[#allocation5 + $0x8] sm:$0xff]  ;;  %v62_v5 = vld [vmem:[#allocation5 + $0x90] sm:$0xff]  ;;  %s158_s8 = sshll.u32 %s342_s1, 4  ;;  %s159_s8 = int_to_ptr.vmem [resolvable:$true] %s158_s8 }
  0x29   :  { %v63_v6 = vld [vmem:[#allocation5 + $0x98] sm:$0xff]  ;;  %v211_v7 = vpack.c.bf16 %v45_v4, %v44_v2  ;;  %v46_v9 = vld [vmem:[#allocation5 + $0x10] sm:$0xff]  ;;  %v64_v11 = vld [vmem:[#allocation5 + $0xa0] sm:$0xff]  ;;  %s308_s9 = scalar_lea.vmem %s159_s8, 256  ;;  %p313_p3 = scmp.lt.s32.totalorder %s159_s8, %s159_s8 }
  0x2a   :  { %v213_v8 = vpack.c.bf16 %v63_v6, %v62_v5  ;;  %v47_v10 = vld [vmem:[#allocation5 + $0x18] sm:$0xff]  ;;  %210 = vmatprep.subr.bf16.mxu0 %v209_v3  ;;  %241 = vmatprep.subr.bf16.mxu1 %v209_v3  ;;  %v65_v12 = vld [vmem:[#allocation5 + $0xa8] sm:$0xff]  ;;  %v48_v15 = vld [vmem:[#allocation5 + $0x20] sm:$0xff]  ;;  %p309_p2 = scmp.ne.s32.totalorder %s159_s8, %s308_s9  ;;  %p314_p4 = scmp.lt.s32.totalorder %s308_s9, %s308_s9 }
  0x2b   :  { %212 = vmatpush3.bf16.msra.mxu0 %v211_v7  ;;  %249 = vmatpush3.bf16.msra.mxu1 %v211_v7  ;;  %v215_v13 = vpack.c.bf16 %v47_v10, %v46_v9  ;;  %v217_v14 = vpack.c.bf16 %v65_v12, %v64_v11  ;;  %v49_v16 = vld [vmem:[#allocation5 + $0x28] sm:$0xff]  ;;  %v66_v17 = vld [vmem:[#allocation5 + $0xb0] sm:$0xff]  ;;  %v67_v18 = vld [vmem:[#allocation5 + $0xb8] sm:$0xff] }
  0x2c   :  { %214 = vmatprep.subr.bf16.mxu0 %v213_v8  ;;  %242 = vmatprep.subr.bf16.mxu1 %v213_v8  ;;  %v219_v19 = vpack.c.bf16 %v49_v16, %v48_v15  ;;  %v221_v20 = vpack.c.bf16 %v67_v18, %v66_v17  ;;  %v50_v21 = vld [vmem:[#allocation5 + $0x30] sm:$0xff]  ;;  %v51_v22 = vld [vmem:[#allocation5 + $0x38] sm:$0xff]  ;;  %v68_v23 = vld [vmem:[#allocation5 + $0xc0] sm:$0xff]  ;;  %p315_p5 = por %p314_p4, %p313_p3 }
  0x2d   :  { %v69_v24 = vld [vmem:[#allocation5 + $0xc8] sm:$0xff]  ;;  %v43_v26 = vld [vmem:[#allocation2 + $0x18] sm:$0xff]  ;;  %v223_v27 = vpack.c.bf16 %v51_v22, %v50_v21  ;;  %v52_v29 = vld [vmem:[#allocation5 + $0x40] sm:$0xff] }
  0x2e   :  { %v41_v25 = vld [vmem:[#allocation2 + $0x8] sm:$0xff]  ;;  %v225_v28 = vpack.c.bf16 %v69_v24, %v68_v23  ;;  %v70_v31 = vld [vmem:[#allocation5 + $0xd0] sm:$0xff]  ;;  %v71_v32 = vld [vmem:[#allocation5 + $0xd8] sm:$0xff]  ;;  %145 = vmatprep.mubr.f32.mxu1 %v43_v26  ;;  %p316_p6 = pnand %p315_p5, %p309_p2 }
  0x2f   :  { %216 = vmatpush3.bf16.msra.mxu0 %v215_v13  ;;  %250 = vmatpush3.bf16.msra.mxu1 %v215_v13  ;;  %v53_v30 = vld [vmem:[#allocation5 + $0x48] sm:$0xff]  ;;  %v229_v34 = vpack.c.bf16 %v71_v32, %v70_v31  ;;  %v54_v35 = vld [vmem:[#allocation5 + $0x50] sm:$0xff]  ;;  %v55_v36 = vld [vmem:[#allocation5 + $0x58] sm:$0xff] }
  0x30   :  { %218 = vmatprep.subr.bf16.mxu0 %v217_v14  ;;  %243 = vmatprep.subr.bf16.mxu1 %v217_v14  ;;  %v227_v33 = vpack.c.bf16 %v53_v30, %v52_v29  ;;  %v72_v37 = vld [vmem:[#allocation5 + $0xe0] sm:$0xff]  ;;  %v73_v38 = vld [vmem:[#allocation5 + $0xe8] sm:$0xff]  ;;  %v231_v39 = vpack.c.bf16 %v55_v36, %v54_v35  ;;  %v74_v43 = vld [vmem:[#allocation5 + $0xf0] sm:$0xff] }
  0x31   :  { %140 = vmatprep.mubr.f32.mxu0 %v41_v25  ;;  %v233_v40 = vpack.c.bf16 %v73_v38, %v72_v37  ;;  %v56_v41 = vld [vmem:[#allocation5 + $0x60] sm:$0xff]  ;;  %v57_v42 = vld [vmem:[#allocation5 + $0x68] sm:$0xff]  ;;  %v75_v44 = vld [vmem:[#allocation5 + $0xf8] sm:$0xff] }
  0x32   :  { %v235_v45 = vpack.c.bf16 %v57_v42, %v56_v41  ;;  %v237_v46 = vpack.c.bf16 %v75_v44, %v74_v43  ;;  %v58_v47 = vld [vmem:[#allocation5 + $0x70] sm:$0xff]  ;;  %v59_v48 = vld [vmem:[#allocation5 + $0x78] sm:$0xff]  ;;  %v40_v50 = vld [vmem:[#allocation2] sm:$0xff] }
  0x33   :  { %220 = vmatpush3.bf16.msra.mxu0 %v219_v19  ;;  %251 = vmatpush3.bf16.msra.mxu1 %v219_v19  ;;  %v239_v49 = vpack.c.bf16 %v59_v48, %v58_v47  ;;  %v42_v51 = vld [vmem:[#allocation2 + $0x10] sm:$0xff] }
  0x34   :  { %222 = vmatprep.subr.bf16.mxu0 %v221_v20  ;;  %244 = vmatprep.subr.bf16.mxu1 %v221_v20 }
  0x37   :  { %224 = vmatpush3.bf16.msra.mxu0 %v223_v27  ;;  %252 = vmatpush3.bf16.msra.mxu1 %v223_v27 }
  0x38   :  { %226 = vmatprep.subr.bf16.mxu0 %v225_v28  ;;  %245 = vmatprep.subr.bf16.mxu1 %v225_v28 }
  0x3b   :  { %228 = vmatpush3.bf16.msra.mxu0 %v227_v33  ;;  %253 = vmatpush3.bf16.msra.mxu1 %v227_v33 }
  0x3c   :  { %230 = vmatprep.subr.bf16.mxu0 %v229_v34  ;;  %246 = vmatprep.subr.bf16.mxu1 %v229_v34 }
  0x3f   :  { %232 = vmatpush3.bf16.msra.mxu0 %v231_v39  ;;  %254 = vmatpush3.bf16.msra.mxu1 %v231_v39 }
  0x40   :  { %234 = vmatprep.subr.bf16.mxu0 %v233_v40  ;;  %247 = vmatprep.subr.bf16.mxu1 %v233_v40 }
  0x43   :  { %236 = vmatpush3.bf16.msra.mxu0 %v235_v45  ;;  %255 = vmatpush3.bf16.msra.mxu1 %v235_v45 }
  0x44   :  { %238 = vmatprep.subr.bf16.mxu0 %v237_v46  ;;  %248 = vmatprep.subr.bf16.mxu1 %v237_v46 }
  0x47   :  { %240 = vmatpush3.bf16.msra.mxu0 %v239_v49  ;;  %256 = vmatpush3.bf16.msra.mxu1 %v239_v49 }
  0x4a   :  { %141 = vmatmul.mubr.f32.vlgmr.msra.gmra.mrb[0].mxu0 %v40_v50  ;;  %146 = vmatmul.mubr.f32.vlgmr.msra.gmra.mrb[0].mxu1 %v42_v51 }
 0x11d   :  { %v203_v52 = vpop.f32.mrb[0].mxu0  ;;  %v206_v53 = vpop.f32.mrb[0].mxu1 }
 0x11e   :  { %v204_v54 = vpop.f32.mrb[1].mxu0  ;;  %v207_v55 = vpop.f32.mrb[1].mxu1 }
 0x11f   :  { %v205_v56 = vadd.f32 %v204_v54, %v203_v52  ;;  %v208_v57 = vadd.f32 %v207_v55, %v206_v53 }
 0x121   :  { %151 = vst [vmem:[#allocation7] sm:$0xff] %v205_v56  ;;  %152 = vst [vmem:[#allocation7 + $0x8] sm:$0xff] %v208_v57 }
 0x122   :  { %319 = shalt.err (!%p316_p6)
}
 0x123   :  { %s320_s12 = scalar_lea.hbm %s402_s2, 256 }
 0x124   :  { %p321_p7 = scmp.ne.s32.totalorder %s402_s2, %s320_s12  ;;  %p324_p8 = scmp.lt.u32.totalorder %s320_s12, %s402_s2 }
 0x126   :  { %p326_p9 = pnand %p324_p8, %p321_p7 }
 0x128   :  { %329 = shalt.err (!%p326_p9)
}
 0x129   :  { %164 = dma.vmem_to_hbm [thread:$0]  %s159_s8, 256, %s402_s2, [#allocation4], %s340_s0, %s340_s0, %s341_s5  }
 0x12a   :  { %334 = dma.done.wait [#allocation4], 256  }
 0x12b   :  { %335 = vsyncadd [#allocation4], 4294967040 }
 0x12c   :  { %168 = vsyncpa [#allocation3], 1 }
 0x12d   :  { %169 = vsyncpa [#allocation6], 1 }
 0x12e   :  { %170 = vsyncpa [#allocation4], 1 }

</bundles_post_ra>
